<compile_context>
chip_gen: v5e
topology: v5e:2x2
jax: 0.10.0
libtpu: 0.0.40
codegen_flags: <defaults>
</compile_context>

<pallas_src>
import functools

import jax
import jax.numpy as jnp
from jax.experimental import pallas as pl
from jax.experimental.pallas import tpu as pltpu


def _round_up(x, m):
    return (x + m - 1) // m * m


def _cdiv(a, b):
    return -(-a // b)


def _vmem_budget_bytes():
    """~75% of this chip's physical VMEM; conservative fallback if unknown."""
    try:
        info = pltpu.get_tpu_info()
        cap = getattr(info, "vmem_capacity_bytes", None)
        if cap:
            return int(cap) * 3 // 4
    except Exception:
        pass
    return 48 * 2**20  # safe on every generation (v7x has only 64 MiB)


# ----------------------------------------------------------------------------
# Fused kernel: whole MLP forward for one batch tile.
#   refs = (x_ref, w0, b0, w1, b1, ..., w_{L-1}, b_{L-1}, o_ref)
#   x_ref: (tm, D0p)          compute dtype (bf16)
#   w_l  : (D_lp, D_{l+1}p)   compute dtype, pre-transposed + zero padded
#   b_l  : (1, D_{l+1}p)      f32, zero padded
#   o_ref: (tm, D_Lp)         out dtype
# ----------------------------------------------------------------------------
def _fused_mlp_kernel(*refs, n_layers):
    x_ref = refs[0]
    o_ref = refs[1 + 2 * n_layers]
    h = x_ref[...]                      # compute dtype (bf16)
    compute_dtype = h.dtype
    acc = None
    for l in range(n_layers):
        w_ref = refs[1 + 2 * l]
        b_ref = refs[2 + 2 * l]
        acc = jnp.dot(h, w_ref[...], preferred_element_type=jnp.float32)
        acc = acc + b_ref[...]          # f32 bias broadcast (1, Dout) -> (tm, Dout)
        if l < n_layers - 1:
            # ReLU in f32; narrow only as the next MXU matmul operand.
            h = jnp.maximum(acc, 0.0).astype(compute_dtype)
    o_ref[...] = acc.astype(o_ref.dtype)


# ----------------------------------------------------------------------------
# One-time parameter preparation (hoisted out of the per-call path).
# params: list of (w_t (In, Out) f32, b (Out,) f32)  [w_t == torch W^T]
# Returns (padded_params, out_width): padded_params is a list of
# (wp (Inp, Outp) compute_dtype, bp (1, Outp) f32) with 128-padded dims.
# Zero padding is exact: padded input cols / weight rows-cols / biases are 0,
# so padded output columns stay 0 through ReLU and every subsequent layer.
# ----------------------------------------------------------------------------
def prepare_mlp_params(params, *, compute_dtype=jnp.bfloat16):
    dims = [params[0][0].shape[0]] + [w_t.shape[1] for (w_t, _) in params]
    pdims = [_round_up(d, 128) for d in dims]
    padded = []
    for l, (w_t, b) in enumerate(params):
        din, dout = w_t.shape
        wp = jnp.zeros((pdims[l], pdims[l + 1]), compute_dtype)
        wp = wp.at[:din, :dout].set(w_t.astype(compute_dtype))
        bp = jnp.zeros((1, pdims[l + 1]), jnp.float32)
        bp = bp.at[0, :dout].set(b.astype(jnp.float32))
        padded.append((jax.block_until_ready(wp), jax.block_until_ready(bp)))
    return padded, dims[-1]


# ----------------------------------------------------------------------------
# Forward pass: pad x (only x) per call, single fused pallas_call.
# ----------------------------------------------------------------------------
def mlp_forward(x, padded_params, out_width, *, block_m=512,
                out_dtype=jnp.float32):
    B, d_in = x.shape
    n_layers = len(padded_params)
    compute_dtype = padded_params[0][0].dtype
    pdims = [padded_params[0][0].shape[0]] + [wp.shape[1]
                                              for (wp, _) in padded_params]
    assert d_in <= pdims[0], "input width does not match prepared params"

    # Batch tiling: big tiles (MXU fill + amortize ~0.35us/step overhead),
    # multiple of 16 rows (bf16 sublane packing), never split a batch that
    # fits one tile; split into 2 tiles when B is large so v7x megacore can
    # shard across both TensorCores.
    block_m = max(16, _round_up(block_m, 16))
    n_tiles = max(1, _cdiv(B, block_m))
    if n_tiles == 1 and B >= 512:
        n_tiles = 2
    tm = _round_up(_cdiv(B, n_tiles), 16)
    b_pad = n_tiles * tm
    grid = (n_tiles,)

    xp = jnp.zeros((b_pad, pdims[0]), compute_dtype)
    xp = xp.at[:B, :d_in].set(x.astype(compute_dtype))

    flat_inputs = [xp]
    for wp, bp in padded_params:
        flat_inputs += [wp, bp]

    itemsize = jnp.dtype(compute_dtype).itemsize
    out_itemsize = jnp.dtype(out_dtype).itemsize
    w_bytes = sum(pdims[l] * pdims[l + 1] * itemsize for l in range(n_layers))
    b_bytes = sum(pdims[l + 1] * 4 for l in range(n_layers))
    io_bytes = b_pad * (pdims[0] * itemsize + pdims[-1] * out_itemsize)
    flops = 2 * b_pad * sum(pdims[l] * pdims[l + 1] for l in range(n_layers))
    cost = pl.CostEstimate(flops=flops, transcendentals=0,
                           bytes_accessed=io_bytes + w_bytes + b_bytes)

    max_pd = max(pdims)
    budget = _vmem_budget_bytes()

    def _vmem_limit(param_buffers):
        need = (2 * tm * pdims[0] * itemsize           # x tile (double-buffered)
                + 2 * tm * pdims[-1] * out_itemsize    # out tile (double-buffered)
                + param_buffers * (w_bytes + b_bytes)  # resident weights/biases
                + 2 * tm * max_pd * (4 + itemsize))    # live f32 acc + bf16 h temps
        limit = max(need * 5 // 4, 32 * 2**20)
        if limit > budget:
            # TODO(synk): switch to K/N reduction-tiled path instead of clamping
            # once layer widths outgrow resident-weight VMEM (v7x: 64 MiB).
            limit = budget
        return int(limit)

    def _build_specs(buffer_params):
        in_specs = [pl.BlockSpec((tm, pdims[0]), lambda i: (i, 0))]
        for l in range(n_layers):
            w_shape = (pdims[l], pdims[l + 1])
            b_shape = (1, pdims[l + 1])
            if buffer_params:
                # Constant block index + single buffer: fetched once, resident.
                in_specs.append(pl.BlockSpec(w_shape, lambda i: (0, 0),
                                             pipeline_mode=pl.Buffered(1)))
                in_specs.append(pl.BlockSpec(b_shape, lambda i: (0, 0),
                                             pipeline_mode=pl.Buffered(1)))
            else:
                in_specs.append(pl.BlockSpec(w_shape, lambda i: (0, 0)))
                in_specs.append(pl.BlockSpec(b_shape, lambda i: (0, 0)))
        return in_specs

    kernel = functools.partial(_fused_mlp_kernel, n_layers=n_layers)

    def _call(buffer_params):
        return pl.pallas_call(
            kernel,
            out_shape=jax.ShapeDtypeStruct((b_pad, pdims[-1]), out_dtype),
            grid=grid,
            in_specs=_build_specs(buffer_params),
            out_specs=pl.BlockSpec((tm, pdims[-1]), lambda i: (i, 0)),
            compiler_params=pltpu.CompilerParams(
                dimension_semantics=("parallel",),
                vmem_limit_bytes=_vmem_limit(1 if buffer_params else 2),
            ),
            cost_estimate=cost,
        )(*flat_inputs)

    try:
        out = _call(True)      # Buffered(1) on resident weights/biases
    except Exception:          # fallback: default double-buffered specs
        out = _call(False)

    return out[:B, :out_width]


def init_mlp_params(layer_widths, key):
    """Deterministic init mimicking nn.Linear default: U(-1/sqrt(in), 1/sqrt(in))."""
    params = []
    for fan_in, fan_out in zip(layer_widths[:-1], layer_widths[1:]):
        key, kw, kb = jax.random.split(key, 3)
        bound = 1.0 / jnp.sqrt(jnp.float32(fan_in))
        # stored transposed: (In, Out) == W^T of torch's (Out, In)
        w_t = jax.random.uniform(
            kw, (fan_in, fan_out), jnp.float32, minval=-bound, maxval=bound
        )
        b = jax.random.uniform(
            kb, (fan_out,), jnp.float32, minval=-bound, maxval=bound
        )
        params.append((w_t, b))
    return params


if __name__ == "__main__":
    # activation_function = ReLU; widths 16 -> 32 -> 32 -> 8, batch 64 (small).
    layer_widths = [16, 32, 32, 8]
    batch = 64

    key = jax.random.PRNGKey(0)
    key, kx = jax.random.split(key)
    x = jax.random.normal(kx, (batch, layer_widths[0]), jnp.float32)
    params = init_mlp_params(layer_widths, key)

    # One-time parameter preparation (padding + bf16 cast hoisted out of forward).
    padded_params, out_width = prepare_mlp_params(params)

    # Pure-JAX reference with identical numerics (bf16 operands, f32 accumulate,
    # f32 bias/ReLU).
    ref_h = x.astype(jnp.bfloat16)
    acc = None
    for i, (w_t, b) in enumerate(params):
        acc = jnp.dot(ref_h, w_t.astype(jnp.bfloat16),
                      preferred_element_type=jnp.float32) + b
        if i != len(params) - 1:
            ref_h = jnp.maximum(acc, 0.0).astype(jnp.bfloat16)
    ref = acc

    # Default path: B=64 fits a single tile -> single grid step, no needless split.
    y = jax.block_until_ready(mlp_forward(x, padded_params, out_width))
    assert y.shape == (batch, layer_widths[-1])
    assert jnp.allclose(y, ref, atol=1e-3, rtol=1e-3), (
        float(jnp.max(jnp.abs(y - ref))))

    # Multi-tile path (resident weights across grid steps) for coverage.
    y2 = jax.block_until_ready(mlp_forward(x, padded_params, out_width,
                                           block_m=32))
    assert jnp.allclose(y2, ref, atol=1e-3, rtol=1e-3), (
        float(jnp.max(jnp.abs(y2 - ref))))

    print("KERNEL_OK")
</pallas_src>

<mosaic_0001>
module attributes {stable_mosaic.version = 11 : i64} {
  func.func @_fused_mlp_kernel(%arg0: i32, %arg1: memref<64x128xbf16, #tpu.memory_space<vmem>>, %arg2: memref<128x128xbf16, #tpu.memory_space<vmem>>, %arg3: memref<1x128xf32, #tpu.memory_space<vmem>>, %arg4: memref<128x128xbf16, #tpu.memory_space<vmem>>, %arg5: memref<1x128xf32, #tpu.memory_space<vmem>>, %arg6: memref<128x128xbf16, #tpu.memory_space<vmem>>, %arg7: memref<1x128xf32, #tpu.memory_space<vmem>>, %arg8: memref<64x128xf32, #tpu.memory_space<vmem>>) attributes {dimension_semantics = [#tpu.dimension_semantics<parallel>], iteration_bounds = array<i64: 1>, scalar_prefetch = 0 : i64, scratch_operands = 0 : i64, tpu.core_type = #tpu.core_type<tc>, window_params = [{transform_indices = @transform_0, window_bounds = array<i64: 64, 128>}, {pipeline_mode = #tpu.pipeline_mode<synchronous>, transform_indices = @transform_1, window_bounds = array<i64: 128, 128>}, {pipeline_mode = #tpu.pipeline_mode<synchronous>, transform_indices = @transform_2, window_bounds = array<i64: 1, 128>}, {pipeline_mode = #tpu.pipeline_mode<synchronous>, transform_indices = @transform_3, window_bounds = array<i64: 128, 128>}, {pipeline_mode = #tpu.pipeline_mode<synchronous>, transform_indices = @transform_4, window_bounds = array<i64: 1, 128>}, {pipeline_mode = #tpu.pipeline_mode<synchronous>, transform_indices = @transform_5, window_bounds = array<i64: 128, 128>}, {pipeline_mode = #tpu.pipeline_mode<synchronous>, transform_indices = @transform_6, window_bounds = array<i64: 1, 128>}, {transform_indices = @transform_7, window_bounds = array<i64: 64, 128>}]} {
    %c0 = arith.constant 0 : index
    %c0_0 = arith.constant 0 : index
    %0 = vector.load %arg1[%c0, %c0_0] : memref<64x128xbf16, #tpu.memory_space<vmem>>, vector<64x128xbf16>
    %c0_1 = arith.constant 0 : index
    %c0_2 = arith.constant 0 : index
    %1 = vector.load %arg2[%c0_1, %c0_2] : memref<128x128xbf16, #tpu.memory_space<vmem>>, vector<128x128xbf16>
    %cst = arith.constant dense<0.000000e+00> : vector<64x128xf32>
    %2 = tpu.matmul %0, %1, %cst {dimension_numbers = #tpu.dot_dimension_numbers<[1], [0], [0], [1], [0, 0, 1, 1], [], []>} : vector<64x128xbf16>, vector<128x128xbf16>, vector<64x128xf32> -> vector<64x128xf32>
    %c0_3 = arith.constant 0 : index
    %c0_4 = arith.constant 0 : index
    %3 = vector.load %arg3[%c0_3, %c0_4] : memref<1x128xf32, #tpu.memory_space<vmem>>, vector<1x128xf32>
    %4 = vector.broadcast %3 : vector<1x128xf32> to vector<64x128xf32>
    %5 = arith.addf %2, %4 : vector<64x128xf32>
    %cst_5 = arith.constant 0.000000e+00 : f32
    %6 = vector.broadcast %cst_5 : f32 to vector<64x128xf32>
    %7 = arith.maximumf %5, %6 : vector<64x128xf32>
    %8 = arith.truncf %7 : vector<64x128xf32> to vector<64x128xbf16>
    %c0_6 = arith.constant 0 : index
    %c0_7 = arith.constant 0 : index
    %9 = vector.load %arg4[%c0_6, %c0_7] : memref<128x128xbf16, #tpu.memory_space<vmem>>, vector<128x128xbf16>
    %cst_8 = arith.constant dense<0.000000e+00> : vector<64x128xf32>
    %10 = tpu.matmul %8, %9, %cst_8 {dimension_numbers = #tpu.dot_dimension_numbers<[1], [0], [0], [1], [0, 0, 1, 1], [], []>} : vector<64x128xbf16>, vector<128x128xbf16>, vector<64x128xf32> -> vector<64x128xf32>
    %c0_9 = arith.constant 0 : index
    %c0_10 = arith.constant 0 : index
    %11 = vector.load %arg5[%c0_9, %c0_10] : memref<1x128xf32, #tpu.memory_space<vmem>>, vector<1x128xf32>
    %12 = vector.broadcast %11 : vector<1x128xf32> to vector<64x128xf32>
    %13 = arith.addf %10, %12 : vector<64x128xf32>
    %cst_11 = arith.constant 0.000000e+00 : f32
    %14 = vector.broadcast %cst_11 : f32 to vector<64x128xf32>
    %15 = arith.maximumf %13, %14 : vector<64x128xf32>
    %16 = arith.truncf %15 : vector<64x128xf32> to vector<64x128xbf16>
    %c0_12 = arith.constant 0 : index
    %c0_13 = arith.constant 0 : index
    %17 = vector.load %arg6[%c0_12, %c0_13] : memref<128x128xbf16, #tpu.memory_space<vmem>>, vector<128x128xbf16>
    %cst_14 = arith.constant dense<0.000000e+00> : vector<64x128xf32>
    %18 = tpu.matmul %16, %17, %cst_14 {dimension_numbers = #tpu.dot_dimension_numbers<[1], [0], [0], [1], [0, 0, 1, 1], [], []>} : vector<64x128xbf16>, vector<128x128xbf16>, vector<64x128xf32> -> vector<64x128xf32>
    %c0_15 = arith.constant 0 : index
    %c0_16 = arith.constant 0 : index
    %19 = vector.load %arg7[%c0_15, %c0_16] : memref<1x128xf32, #tpu.memory_space<vmem>>, vector<1x128xf32>
    %20 = vector.broadcast %19 : vector<1x128xf32> to vector<64x128xf32>
    %21 = arith.addf %18, %20 : vector<64x128xf32>
    %c0_17 = arith.constant 0 : index
    %c0_18 = arith.constant 0 : index
    %22 = vector.load %arg8[%c0_17, %c0_18] : memref<64x128xf32, #tpu.memory_space<vmem>>, vector<64x128xf32>
    tpu.vector_store %arg8[%c0_17, %c0_18], %21 {strides = array<i32>} : memref<64x128xf32, #tpu.memory_space<vmem>>, vector<64x128xf32>,
    return
  }
  func.func @transform_0(%arg0: i32) -> (i32, i32) {
    %c0_i32 = arith.constant 0 : i32
    %c0_i32_0 = arith.constant 0 : i32
    return %arg0, %c0_i32 : i32, i32
  }
  func.func @transform_1(%arg0: i32) -> (i32, i32) {
    %c0_i32 = arith.constant 0 : i32
    %c0_i32_0 = arith.constant 0 : i32
    %c0_i32_1 = arith.constant 0 : i32
    return %c0_i32, %c0_i32_0 : i32, i32
  }
  func.func @transform_2(%arg0: i32) -> (i32, i32) {
    %c0_i32 = arith.constant 0 : i32
    %c0_i32_0 = arith.constant 0 : i32
    %c0_i32_1 = arith.constant 0 : i32
    return %c0_i32, %c0_i32_0 : i32, i32
  }
  func.func @transform_3(%arg0: i32) -> (i32, i32) {
    %c0_i32 = arith.constant 0 : i32
    %c0_i32_0 = arith.constant 0 : i32
    %c0_i32_1 = arith.constant 0 : i32
    return %c0_i32, %c0_i32_0 : i32, i32
  }
  func.func @transform_4(%arg0: i32) -> (i32, i32) {
    %c0_i32 = arith.constant 0 : i32
    %c0_i32_0 = arith.constant 0 : i32
    %c0_i32_1 = arith.constant 0 : i32
    return %c0_i32, %c0_i32_0 : i32, i32
  }
  func.func @transform_5(%arg0: i32) -> (i32, i32) {
    %c0_i32 = arith.constant 0 : i32
    %c0_i32_0 = arith.constant 0 : i32
    %c0_i32_1 = arith.constant 0 : i32
    return %c0_i32, %c0_i32_0 : i32, i32
  }
  func.func @transform_6(%arg0: i32) -> (i32, i32) {
    %c0_i32 = arith.constant 0 : i32
    %c0_i32_0 = arith.constant 0 : i32
    %c0_i32_1 = arith.constant 0 : i32
    return %c0_i32, %c0_i32_0 : i32, i32
  }
  func.func @transform_7(%arg0: i32) -> (i32, i32) {
    %c0_i32 = arith.constant 0 : i32
    %c0_i32_0 = arith.constant 0 : i32
    return %arg0, %c0_i32 : i32, i32
  }
}

module attributes {stable_mosaic.version = 11 : i64} {
  func.func @_fused_mlp_kernel(%arg0: i32, %arg1: memref<64x128xbf16, #tpu.memory_space<vmem>>, %arg2: memref<128x128xbf16, #tpu.memory_space<vmem>>, %arg3: memref<1x128xf32, #tpu.memory_space<vmem>>, %arg4: memref<128x128xbf16, #tpu.memory_space<vmem>>, %arg5: memref<1x128xf32, #tpu.memory_space<vmem>>, %arg6: memref<128x128xbf16, #tpu.memory_space<vmem>>, %arg7: memref<1x128xf32, #tpu.memory_space<vmem>>, %arg8: memref<64x128xf32, #tpu.memory_space<vmem>>) attributes {dimension_semantics = [#tpu.dimension_semantics<parallel>], iteration_bounds = array<i64: 1>, scalar_prefetch = 0 : i64, scratch_operands = 0 : i64, tpu.core_type = #tpu.core_type<tc>, window_params = [{transform_indices = @transform_0, window_bounds = array<i64: 64, 128>}, {pipeline_mode = #tpu.pipeline_mode<synchronous>, transform_indices = @transform_1, window_bounds = array<i64: 128, 128>}, {pipeline_mode = #tpu.pipeline_mode<synchronous>, transform_indices = @transform_2, window_bounds = array<i64: 1, 128>}, {pipeline_mode = #tpu.pipeline_mode<synchronous>, transform_indices = @transform_3, window_bounds = array<i64: 128, 128>}, {pipeline_mode = #tpu.pipeline_mode<synchronous>, transform_indices = @transform_4, window_bounds = array<i64: 1, 128>}, {pipeline_mode = #tpu.pipeline_mode<synchronous>, transform_indices = @transform_5, window_bounds = array<i64: 128, 128>}, {pipeline_mode = #tpu.pipeline_mode<synchronous>, transform_indices = @transform_6, window_bounds = array<i64: 1, 128>}, {transform_indices = @transform_7, window_bounds = array<i64: 64, 128>}]} {
    %c0 = arith.constant 0 : index
    %c0_0 = arith.constant 0 : index
    %0 = vector.load %arg1[%c0, %c0_0] : memref<64x128xbf16, #tpu.memory_space<vmem>>, vector<64x128xbf16>
    %c0_1 = arith.constant 0 : index
    %c0_2 = arith.constant 0 : index
    %1 = vector.load %arg2[%c0_1, %c0_2] : memref<128x128xbf16, #tpu.memory_space<vmem>>, vector<128x128xbf16>
    %cst = arith.constant dense<0.000000e+00> : vector<64x128xf32>
    %2 = tpu.matmul %0, %1, %cst {dimension_numbers = #tpu.dot_dimension_numbers<[1], [0], [0], [1], [0, 0, 1, 1], [], []>} : vector<64x128xbf16>, vector<128x128xbf16>, vector<64x128xf32> -> vector<64x128xf32>
    %c0_3 = arith.constant 0 : index
    %c0_4 = arith.constant 0 : index
    %3 = vector.load %arg3[%c0_3, %c0_4] : memref<1x128xf32, #tpu.memory_space<vmem>>, vector<1x128xf32>
    %4 = vector.broadcast %3 : vector<1x128xf32> to vector<64x128xf32>
    %5 = arith.addf %2, %4 : vector<64x128xf32>
    %cst_5 = arith.constant 0.000000e+00 : f32
    %6 = vector.broadcast %cst_5 : f32 to vector<64x128xf32>
    %7 = arith.maximumf %5, %6 : vector<64x128xf32>
    %8 = arith.truncf %7 : vector<64x128xf32> to vector<64x128xbf16>
    %c0_6 = arith.constant 0 : index
    %c0_7 = arith.constant 0 : index
    %9 = vector.load %arg4[%c0_6, %c0_7] : memref<128x128xbf16, #tpu.memory_space<vmem>>, vector<128x128xbf16>
    %cst_8 = arith.constant dense<0.000000e+00> : vector<64x128xf32>
    %10 = tpu.matmul %8, %9, %cst_8 {dimension_numbers = #tpu.dot_dimension_numbers<[1], [0], [0], [1], [0, 0, 1, 1], [], []>} : vector<64x128xbf16>, vector<128x128xbf16>, vector<64x128xf32> -> vector<64x128xf32>
    %c0_9 = arith.constant 0 : index
    %c0_10 = arith.constant 0 : index
    %11 = vector.load %arg5[%c0_9, %c0_10] : memref<1x128xf32, #tpu.memory_space<vmem>>, vector<1x128xf32>
    %12 = vector.broadcast %11 : vector<1x128xf32> to vector<64x128xf32>
    %13 = arith.addf %10, %12 : vector<64x128xf32>
    %cst_11 = arith.constant 0.000000e+00 : f32
    %14 = vector.broadcast %cst_11 : f32 to vector<64x128xf32>
    %15 = arith.maximumf %13, %14 : vector<64x128xf32>
    %16 = arith.truncf %15 : vector<64x128xf32> to vector<64x128xbf16>
    %c0_12 = arith.constant 0 : index
    %c0_13 = arith.constant 0 : index
    %17 = vector.load %arg6[%c0_12, %c0_13] : memref<128x128xbf16, #tpu.memory_space<vmem>>, vector<128x128xbf16>
    %cst_14 = arith.constant dense<0.000000e+00> : vector<64x128xf32>
    %18 = tpu.matmul %16, %17, %cst_14 {dimension_numbers = #tpu.dot_dimension_numbers<[1], [0], [0], [1], [0, 0, 1, 1], [], []>} : vector<64x128xbf16>, vector<128x128xbf16>, vector<64x128xf32> -> vector<64x128xf32>
    %c0_15 = arith.constant 0 : index
    %c0_16 = arith.constant 0 : index
    %19 = vector.load %arg7[%c0_15, %c0_16] : memref<1x128xf32, #tpu.memory_space<vmem>>, vector<1x128xf32>
    %20 = vector.broadcast %19 : vector<1x128xf32> to vector<64x128xf32>
    %21 = arith.addf %18, %20 : vector<64x128xf32>
    %c0_17 = arith.constant 0 : index
    %c0_18 = arith.constant 0 : index
    %22 = vector.load %arg8[%c0_17, %c0_18] : memref<64x128xf32, #tpu.memory_space<vmem>>, vector<64x128xf32>
    tpu.vector_store %arg8[%c0_17, %c0_18], %21 {strides = array<i32>} : memref<64x128xf32, #tpu.memory_space<vmem>>, vector<64x128xf32>,
    return
  }
  func.func @transform_0(%arg0: i32) -> (i32, i32) {
    %c0_i32 = arith.constant 0 : i32
    %c0_i32_0 = arith.constant 0 : i32
    return %arg0, %c0_i32 : i32, i32
  }
  func.func @transform_1(%arg0: i32) -> (i32, i32) {
    %c0_i32 = arith.constant 0 : i32
    %c0_i32_0 = arith.constant 0 : i32
    %c0_i32_1 = arith.constant 0 : i32
    return %c0_i32, %c0_i32_0 : i32, i32
  }
  func.func @transform_2(%arg0: i32) -> (i32, i32) {
    %c0_i32 = arith.constant 0 : i32
    %c0_i32_0 = arith.constant 0 : i32
    %c0_i32_1 = arith.constant 0 : i32
    return %c0_i32, %c0_i32_0 : i32, i32
  }
  func.func @transform_3(%arg0: i32) -> (i32, i32) {
    %c0_i32 = arith.constant 0 : i32
    %c0_i32_0 = arith.constant 0 : i32
    %c0_i32_1 = arith.constant 0 : i32
    return %c0_i32, %c0_i32_0 : i32, i32
  }
  func.func @transform_4(%arg0: i32) -> (i32, i32) {
    %c0_i32 = arith.constant 0 : i32
    %c0_i32_0 = arith.constant 0 : i32
    %c0_i32_1 = arith.constant 0 : i32
    return %c0_i32, %c0_i32_0 : i32, i32
  }
  func.func @transform_5(%arg0: i32) -> (i32, i32) {
    %c0_i32 = arith.constant 0 : i32
    %c0_i32_0 = arith.constant 0 : i32
    %c0_i32_1 = arith.constant 0 : i32
    return %c0_i32, %c0_i32_0 : i32, i32
  }
  func.func @transform_6(%arg0: i32) -> (i32, i32) {
    %c0_i32 = arith.constant 0 : i32
    %c0_i32_0 = arith.constant 0 : i32
    %c0_i32_1 = arith.constant 0 : i32
    return %c0_i32, %c0_i32_0 : i32, i32
  }
  func.func @transform_7(%arg0: i32) -> (i32, i32) {
    %c0_i32 = arith.constant 0 : i32
    %c0_i32_0 = arith.constant 0 : i32
    return %arg0, %c0_i32 : i32, i32
  }
}

</mosaic_0001>

<bundles_post_ra>
// kernel: tpu_custom_call.1
= control target key start
LH: loop header
LB: loop body
LE: loop exit
PB: predicated region body
PF: predicated region fallthrough
CT: control target
= control target key end

     0   :  { %12 = vsyncpa [#allocation3], 0  ;;  %s827_s0 = inlined_call_operand.hbm [shape: bf16[64,128], index: 0, kind: input, shape index: {}]   ;;  %s828_s1 = inlined_call_operand.hbm [shape: bf16[128,128], index: 1, kind: input, shape index: {}]   ;;  %s829_s2 = inlined_call_operand.vmem [shape: f32[1,128], index: 2, kind: input, shape index: {}]   ;;  %s830_s3 = inlined_call_operand.hbm [shape: bf16[128,128], index: 3, kind: input, shape index: {}]   ;;  %s831_s4 = inlined_call_operand.vmem [shape: f32[1,128], index: 4, kind: input, shape index: {}]   ;;  %s832_s5 = inlined_call_operand.hbm [shape: bf16[128,128], index: 5, kind: input, shape index: {}]   ;;  %s833_s6 = inlined_call_operand.vmem [shape: f32[1,128], index: 6, kind: input, shape index: {}]   ;;  %s834_s7 = inlined_call_operand.hbm [shape: f32[64,128], index: 7, kind: output, shape index: {}]  }
   0x1   :  { %13 = vsyncpa [#allocation6], 0 }
   0x2   :  { %14 = vsyncpa [#allocation9], 0 }
   0x3   :  { %15 = vsyncpa [#allocation4], 0  ;;  %s33_s26 = sshll.u32 %s828_s1, 4  ;;  %s754_s27 = smov [#allocation5]   ;;  %s34_s26 = int_to_ptr.hbm [resolvable:$true] %s33_s26 }
   0x4   :  { %s35_s28 = sshll.u32 %s754_s27, 4  ;;  %s20_s8 = sshll.u32 %s827_s0, 4  ;;  %s36_s28 = int_to_ptr.vmem [resolvable:$true] %s35_s28  ;;  %s21_s8 = int_to_ptr.hbm [resolvable:$true] %s20_s8 }
   0x5   :  { %s755_s9 = smov 64   ;;  %s756_s10 = smov 4  }
   0x6   :  { %41 = dma.hbm_to_vmem [thread:$0]  %s34_s26, 1024, %s36_s28, [#allocation6], %s755_s9, %s755_s9, %s756_s10  }
   0x7   :  { %s757_s11 = smov [#allocation2]   ;;  %s48_s15 = sshll.u32 %s830_s3, 4  ;;  %s49_s15 = int_to_ptr.hbm [resolvable:$true] %s48_s15 }
   0x8   :  { %s22_s12 = sshll.u32 %s757_s11, 4  ;;  %s63_s17 = sshll.u32 %s832_s5, 4  ;;  %s23_s12 = int_to_ptr.vmem [resolvable:$true] %s22_s12  ;;  %s64_s17 = int_to_ptr.hbm [resolvable:$true] %s63_s17 }
   0x9   :  { %28 = dma.hbm_to_vmem [thread:$0]  %s21_s8, 512, %s23_s12, [#allocation3], %s755_s9, %s755_s9, %s756_s10  }
   0xa   :  { %s758_s18 = smov [#allocation7]   ;;  %s759_s0 = smov [#allocation8]  }
   0xb   :  { %s50_s19 = sshll.u32 %s758_s18, 4  ;;  %s65_s20 = sshll.u32 %s759_s0, 4  ;;  %s51_s19 = int_to_ptr.vmem [resolvable:$true] %s50_s19  ;;  %s66_s20 = int_to_ptr.vmem [resolvable:$true] %s65_s20 }
   0xc   :  { %56 = dma.hbm_to_vmem [thread:$0]  %s49_s15, 1024, %s51_s19, [#allocation6], %s755_s9, %s755_s9, %s756_s10  }
   0xd   :  { %71 = dma.hbm_to_vmem [thread:$0]  %s64_s17, 1024, %s66_s20, [#allocation9], %s755_s9, %s755_s9, %s756_s10  }
   0xe   :  { %746 = dma.done.wait [#allocation3], 512  }
   0xf   :  { %747 = vsyncadd [#allocation3], 4294966784 }
  0x10   :  { %748 = dma.done.wait [#allocation6], 2048  }
  0x11   :  { %749 = vsyncadd [#allocation6], 4294965248 }
  0x12   :  { %750 = dma.done.wait [#allocation9], 1024  }
  0x13   :  { %751 = vsyncadd [#allocation9], 4294966272  ;;  %v589_v0 = vld [vmem:[#allocation5 + $0x38] sm:$0xff]  ;;  %v588_v1 = vld [vmem:[#allocation5 + $0x30] sm:$0xff]  ;;  %s451_s26 = sshll.u32 %s834_s7, 4  ;;  %s761_s27 = smov 128   ;;  %s452_s26 = int_to_ptr.hbm [resolvable:$true] %s451_s26 }
  0x14   :  { %190 = vmatpush.bf16.msra.mxu0 %v589_v0  ;;  %606 = vmatpush.bf16.msra.mxu3 %v589_v0  ;;  %v587_v2 = vld [vmem:[#allocation5 + $0x28] sm:$0xff]  ;;  %v586_v3 = vld [vmem:[#allocation5 + $0x20] sm:$0xff]  ;;  %v585_v4 = vld [vmem:[#allocation5 + $0x18] sm:$0xff]  ;;  %s762_s28 = smov 8  }
  0x15   :  { %v584_v5 = vld [vmem:[#allocation5 + $0x10] sm:$0xff]  ;;  %v583_v6 = vld [vmem:[#allocation5 + $0x8] sm:$0xff]  ;;  %v582_v7 = vld [vmem:[#allocation5] sm:$0xff] }
  0x16   :  { %v578_v8 = vld [vmem:[#allocation2] sm:$0xff]  ;;  %v579_v9 = vld [vmem:[#allocation2 + $0x8] sm:$0xff]  ;;  %v597_v10 = vld [vmem:[#allocation7 + $0x38] sm:$0xff] }
  0x17   :  { %299 = vmatpush.bf16.msra.mxu1 %v597_v10  ;;  %v596_v11 = vld [vmem:[#allocation7 + $0x30] sm:$0xff]  ;;  %v595_v12 = vld [vmem:[#allocation7 + $0x28] sm:$0xff]  ;;  %v594_v13 = vld [vmem:[#allocation7 + $0x20] sm:$0xff] }
  0x18   :  { %191 = vmatpush.bf16.msra.mxu0 %v588_v1  ;;  %607 = vmatpush.bf16.msra.mxu3 %v588_v1  ;;  %v580_v14 = vld [vmem:[#allocation2 + $0x10] sm:$0xff]  ;;  %v581_v15 = vld [vmem:[#allocation2 + $0x18] sm:$0xff]  ;;  %v591_v18 = vld [vmem:[#allocation7 + $0x8] sm:$0xff] }
  0x19   :  { %v593_v16 = vld [vmem:[#allocation7 + $0x18] sm:$0xff]  ;;  %v592_v17 = vld [vmem:[#allocation7 + $0x10] sm:$0xff]  ;;  %v590_v19 = vld [vmem:[#allocation7] sm:$0xff] }
  0x1a   :  { %v623_v21 = vld [vmem:[%s829_s2] ss:$0 sm:$0xff]  ;;  %v605_v37 = vld [vmem:[#allocation8 + $0x38] sm:$0xff]  ;;  %v604_v38 = vld [vmem:[#allocation8 + $0x30] sm:$0xff] }
  0x1b   :  { %300 = vmatpush.bf16.msra.mxu1 %v596_v11  ;;  %408 = vmatpush.bf16.msra.mxu2 %v605_v37  ;;  %v603_v41 = vld [vmem:[#allocation8 + $0x28] sm:$0xff]  ;;  %v602_v45 = vld [vmem:[#allocation8 + $0x20] sm:$0xff]  ;;  %v601_v53 = vld [vmem:[#allocation8 + $0x18] sm:$0xff] }
  0x1c   :  { %192 = vmatpush.bf16.msra.mxu0 %v587_v2  ;;  %608 = vmatpush.bf16.msra.mxu3 %v587_v2  ;;  %v600_v54 = vld [vmem:[#allocation8 + $0x10] sm:$0xff]  ;;  %v599_v55 = vld [vmem:[#allocation8 + $0x8] sm:$0xff]  ;;  %v598_v56 = vld [vmem:[#allocation8] sm:$0xff] }
  0x1d   :  { %v624_v58 = vld [vmem:[%s831_s4] ss:$0 sm:$0xff] }
  0x1f   :  { %301 = vmatpush.bf16.msra.mxu1 %v595_v12  ;;  %409 = vmatpush.bf16.msra.mxu2 %v604_v38 }
  0x20   :  { %193 = vmatpush.bf16.msra.mxu0 %v586_v3  ;;  %609 = vmatpush.bf16.msra.mxu3 %v586_v3 }
  0x23   :  { %302 = vmatpush.bf16.msra.mxu1 %v594_v13  ;;  %410 = vmatpush.bf16.msra.mxu2 %v603_v41 }
  0x24   :  { %194 = vmatpush.bf16.msra.mxu0 %v585_v4  ;;  %610 = vmatpush.bf16.msra.mxu3 %v585_v4 }
  0x27   :  { %303 = vmatpush.bf16.msra.mxu1 %v593_v16  ;;  %411 = vmatpush.bf16.msra.mxu2 %v602_v45 }
  0x28   :  { %195 = vmatpush.bf16.msra.mxu0 %v584_v5  ;;  %611 = vmatpush.bf16.msra.mxu3 %v584_v5 }
  0x2b   :  { %304 = vmatpush.bf16.msra.mxu1 %v592_v17  ;;  %412 = vmatpush.bf16.msra.mxu2 %v601_v53 }
  0x2c   :  { %196 = vmatpush.bf16.msra.mxu0 %v583_v6  ;;  %612 = vmatpush.bf16.msra.mxu3 %v583_v6 }
  0x2f   :  { %305 = vmatpush.bf16.msra.mxu1 %v591_v18  ;;  %413 = vmatpush.bf16.msra.mxu2 %v600_v54 }
  0x30   :  { %197 = vmatpush.bf16.msra.mxu0 %v582_v7  ;;  %613 = vmatpush.bf16.msra.mxu3 %v582_v7 }
  0x33   :  { %198 = vmatmul.bf16.vlgmr.msra.gmra.mxu0 %v578_v8  ;;  %203 = vmatmul.bf16.vlgmr.msra.gmra.mxu3 %v579_v9 }
  0x34   :  { %306 = vmatpush.bf16.msra.mxu1 %v590_v19  ;;  %414 = vmatpush.bf16.msra.mxu2 %v599_v55 }
  0x38   :  { %415 = vmatpush.bf16.msra.mxu2 %v598_v56 }
  0x43   :  { %208 = vmatmul.bf16.gmra.mxu3 %v580_v14 }
  0x53   :  { %213 = vmatmul.bf16.gmra.mxu3 %v581_v15 }
  0xb0   :  { %v199_v20 = vpop.f32.mrf.mxu0 }
  0xb1   :  { %v200_v23 = vadd.f32 %v623_v21, %v199_v20 }
  0xb3   :  { %v219_v26 = vmax.f32 %v200_v23, 0.0 }
  0xb6   :  { %v204_v22 = vpop.f32.mrf.mxu3 }
  0xb7   :  { %v205_v30 = vadd.f32 %v623_v21, %v204_v22  ;;  %v625_v22 = vld [vmem:[%s833_s6] ss:$0 sm:$0xff]  ;;  %s760_s6 = smov [#allocation10]  }
  0xb8   :  { %v201_v24 = vpop.f32.mrf.mxu0  ;;  %s449_s23 = sshll.u32 %s760_s6, 4  ;;  %s450_s23 = int_to_ptr.vmem [resolvable:$true] %s449_s23 }
  0xb9   :  { %v202_v25 = vadd.f32 %v623_v21, %v201_v24  ;;  %v221_v33 = vmax.f32 %v205_v30, 0.0 }
  0xbb   :  { %v220_v27 = vmax.f32 %v202_v25, 0.0 }
  0xbd   :  { %v227_v28 = vpack.c.bf16 %v220_v27, %v219_v26 }
  0xbe   :  { %v206_v29 = vpop.f32.mrf.mxu3 }
  0xbf   :  { %307 = vmatmul.bf16.vlgmr.msra.gmra.mxu1 %v227_v28  ;;  %v207_v31 = vadd.f32 %v623_v21, %v206_v29 }
  0xc1   :  { %v222_v34 = vmax.f32 %v207_v31, 0.0 }
  0xc3   :  { %v228_v35 = vpack.c.bf16 %v222_v34, %v221_v33 }
  0xc6   :  { %v209_v32 = vpop.f32.mrf.mxu3 }
  0xc7   :  { %v210_v39 = vadd.f32 %v623_v21, %v209_v32 }
  0xc9   :  { %v223_v43 = vmax.f32 %v210_v39, 0.0 }
  0xce   :  { %v211_v36 = vpop.f32.mrf.mxu3 }
  0xcf   :  { %312 = vmatmul.bf16.gmra.mxu1 %v228_v35  ;;  %v212_v40 = vadd.f32 %v623_v21, %v211_v36 }
  0xd1   :  { %v224_v44 = vmax.f32 %v212_v40, 0.0 }
  0xd3   :  { %v229_v46 = vpack.c.bf16 %v224_v44, %v223_v43 }
  0xd6   :  { %v214_v42 = vpop.f32.mrf.mxu3 }
  0xd7   :  { %v215_v48 = vadd.f32 %v623_v21, %v214_v42 }
  0xd9   :  { %v225_v50 = vmax.f32 %v215_v48, 0.0 }
  0xde   :  { %v216_v47 = vpop.f32.mrf.mxu3 }
  0xdf   :  { %317 = vmatmul.bf16.gmra.mxu1 %v229_v46  ;;  %v217_v49 = vadd.f32 %v623_v21, %v216_v47 }
  0xe1   :  { %v226_v51 = vmax.f32 %v217_v49, 0.0 }
  0xe3   :  { %v230_v52 = vpack.c.bf16 %v226_v51, %v225_v50 }
  0xef   :  { %322 = vmatmul.bf16.gmra.mxu1 %v230_v52 }
 0x13c   :  { %v308_v57 = vpop.f32.mrf.mxu1 }
 0x13d   :  { %v309_v59 = vadd.f32 %v624_v58, %v308_v57 }
 0x13f   :  { %v328_v62 = vmax.f32 %v309_v59, 0.0 }
 0x144   :  { %v310_v60 = vpop.f32.mrf.mxu1 }
 0x145   :  { %v311_v61 = vadd.f32 %v624_v58, %v310_v60 }
 0x147   :  { %v329_v63 = vmax.f32 %v311_v61, 0.0 }
 0x149   :  { %v336_v0 = vpack.c.bf16 %v329_v63, %v328_v62 }
 0x14b   :  { %416 = vmatmul.bf16.vlgmr.msra.gmra.mxu2 %v336_v0 }
 0x14c   :  { %v313_v1 = vpop.f32.mrf.mxu1 }
 0x14d   :  { %v314_v2 = vadd.f32 %v624_v58, %v313_v1 }
 0x14f   :  { %v330_v5 = vmax.f32 %v314_v2, 0.0 }
 0x154   :  { %v315_v3 = vpop.f32.mrf.mxu1 }
 0x155   :  { %v316_v4 = vadd.f32 %v624_v58, %v315_v3 }
 0x157   :  { %v331_v6 = vmax.f32 %v316_v4, 0.0 }
 0x159   :  { %v337_v7 = vpack.c.bf16 %v331_v6, %v330_v5 }
 0x15b   :  { %421 = vmatmul.bf16.gmra.mxu2 %v337_v7 }
 0x15c   :  { %v318_v8 = vpop.f32.mrf.mxu1 }
 0x15d   :  { %v319_v9 = vadd.f32 %v624_v58, %v318_v8 }
 0x15f   :  { %v332_v12 = vmax.f32 %v319_v9, 0.0 }
 0x164   :  { %v320_v10 = vpop.f32.mrf.mxu1 }
 0x165   :  { %v321_v11 = vadd.f32 %v624_v58, %v320_v10 }
 0x167   :  { %v333_v13 = vmax.f32 %v321_v11, 0.0 }
 0x169   :  { %v338_v14 = vpack.c.bf16 %v333_v13, %v332_v12 }
 0x16b   :  { %426 = vmatmul.bf16.gmra.mxu2 %v338_v14 }
 0x16c   :  { %v323_v15 = vpop.f32.mrf.mxu1 }
 0x16d   :  { %v324_v16 = vadd.f32 %v624_v58, %v323_v15 }
 0x16f   :  { %v334_v19 = vmax.f32 %v324_v16, 0.0 }
 0x174   :  { %v325_v17 = vpop.f32.mrf.mxu1 }
 0x175   :  { %v326_v18 = vadd.f32 %v624_v58, %v325_v17 }
 0x177   :  { %v335_v20 = vmax.f32 %v326_v18, 0.0 }
 0x179   :  { %v339_v21 = vpack.c.bf16 %v335_v20, %v334_v19 }
 0x17b   :  { %431 = vmatmul.bf16.gmra.mxu2 %v339_v21 }
 0x1ce   :  { %v417_v23 = vpop.f32.mrf.mxu2 }
 0x1cf   :  { %v418_v24 = vadd.f32 %v625_v22, %v417_v23 }
 0x1d1   :  { %437 = vst [vmem:[#allocation10] sm:$0xff] %v418_v24 }
 0x1d6   :  { %v419_v25 = vpop.f32.mrf.mxu2 }
 0x1d7   :  { %v420_v26 = vadd.f32 %v625_v22, %v419_v25 }
 0x1d9   :  { %438 = vst [vmem:[#allocation10 + $0x8] sm:$0xff] %v420_v26 }
 0x1de   :  { %v422_v27 = vpop.f32.mrf.mxu2 }
 0x1df   :  { %v423_v28 = vadd.f32 %v625_v22, %v422_v27 }
 0x1e1   :  { %439 = vst [vmem:[#allocation10 + $0x10] sm:$0xff] %v423_v28 }
 0x1e6   :  { %v424_v29 = vpop.f32.mrf.mxu2 }
 0x1e7   :  { %v425_v30 = vadd.f32 %v625_v22, %v424_v29 }
 0x1e9   :  { %440 = vst [vmem:[#allocation10 + $0x18] sm:$0xff] %v425_v30 }
 0x1ee   :  { %v427_v31 = vpop.f32.mrf.mxu2 }
 0x1ef   :  { %v428_v32 = vadd.f32 %v625_v22, %v427_v31 }
 0x1f1   :  { %441 = vst [vmem:[#allocation10 + $0x20] sm:$0xff] %v428_v32 }
 0x1f6   :  { %v429_v33 = vpop.f32.mrf.mxu2 }
 0x1f7   :  { %v430_v34 = vadd.f32 %v625_v22, %v429_v33 }
 0x1f9   :  { %442 = vst [vmem:[#allocation10 + $0x28] sm:$0xff] %v430_v34 }
 0x1fe   :  { %v432_v35 = vpop.f32.mrf.mxu2 }
 0x1ff   :  { %v433_v36 = vadd.f32 %v625_v22, %v432_v35 }
 0x201   :  { %443 = vst [vmem:[#allocation10 + $0x30] sm:$0xff] %v433_v36 }
 0x206   :  { %v434_v37 = vpop.f32.mrf.mxu2 }
 0x207   :  { %v435_v38 = vadd.f32 %v625_v22, %v434_v37 }
 0x209   :  { %444 = vst [vmem:[#allocation10 + $0x38] sm:$0xff] %v435_v38 }
 0x20a   :  { %457 = dma.vmem_to_hbm [thread:$0]  %s450_s23, 1024, %s452_s26, [#allocation4], %s761_s27, %s761_s27, %s762_s28  }
 0x20b   :  { %752 = dma.done.wait [#allocation4], 1024  }
 0x20c   :  { %753 = vsyncadd [#allocation4], 4294966272 }
 0x20d   :  { %462 = vsyncpa [#allocation3], 1 }
 0x20e   :  { %463 = vsyncpa [#allocation6], 1 }
 0x20f   :  { %464 = vsyncpa [#allocation9], 1 }
 0x210   :  { %465 = vsyncpa [#allocation4], 1 }

// kernel: tpu_custom_call.1
= control target key start
LH: loop header
LB: loop body
LE: loop exit
PB: predicated region body
PF: predicated region fallthrough
CT: control target
= control target key end

     0   :  { %12 = vsyncpa [#allocation3], 0  ;;  %s827_s0 = inlined_call_operand.hbm [shape: bf16[64,128], index: 0, kind: input, shape index: {}]   ;;  %s828_s1 = inlined_call_operand.hbm [shape: bf16[128,128], index: 1, kind: input, shape index: {}]   ;;  %s829_s2 = inlined_call_operand.vmem [shape: f32[1,128], index: 2, kind: input, shape index: {}]   ;;  %s830_s3 = inlined_call_operand.hbm [shape: bf16[128,128], index: 3, kind: input, shape index: {}]   ;;  %s831_s4 = inlined_call_operand.vmem [shape: f32[1,128], index: 4, kind: input, shape index: {}]   ;;  %s832_s5 = inlined_call_operand.hbm [shape: bf16[128,128], index: 5, kind: input, shape index: {}]   ;;  %s833_s6 = inlined_call_operand.vmem [shape: f32[1,128], index: 6, kind: input, shape index: {}]   ;;  %s834_s7 = inlined_call_operand.hbm [shape: f32[64,128], index: 7, kind: output, shape index: {}]  }
   0x1   :  { %13 = vsyncpa [#allocation6], 0 }
   0x2   :  { %14 = vsyncpa [#allocation9], 0 }
   0x3   :  { %15 = vsyncpa [#allocation4], 0  ;;  %s33_s26 = sshll.u32 %s828_s1, 4  ;;  %s754_s27 = smov [#allocation5]   ;;  %s34_s26 = int_to_ptr.hbm [resolvable:$true] %s33_s26 }
   0x4   :  { %s35_s28 = sshll.u32 %s754_s27, 4  ;;  %s20_s8 = sshll.u32 %s827_s0, 4  ;;  %s36_s28 = int_to_ptr.vmem [resolvable:$true] %s35_s28  ;;  %s21_s8 = int_to_ptr.hbm [resolvable:$true] %s20_s8 }
   0x5   :  { %s755_s9 = smov 64   ;;  %s756_s10 = smov 4  }
   0x6   :  { %41 = dma.hbm_to_vmem [thread:$0]  %s34_s26, 1024, %s36_s28, [#allocation6], %s755_s9, %s755_s9, %s756_s10  }
   0x7   :  { %s757_s11 = smov [#allocation2]   ;;  %s48_s15 = sshll.u32 %s830_s3, 4  ;;  %s49_s15 = int_to_ptr.hbm [resolvable:$true] %s48_s15 }
   0x8   :  { %s22_s12 = sshll.u32 %s757_s11, 4  ;;  %s63_s17 = sshll.u32 %s832_s5, 4  ;;  %s23_s12 = int_to_ptr.vmem [resolvable:$true] %s22_s12  ;;  %s64_s17 = int_to_ptr.hbm [resolvable:$true] %s63_s17 }
   0x9   :  { %28 = dma.hbm_to_vmem [thread:$0]  %s21_s8, 512, %s23_s12, [#allocation3], %s755_s9, %s755_s9, %s756_s10  }
   0xa   :  { %s758_s18 = smov [#allocation7]   ;;  %s759_s0 = smov [#allocation8]  }
   0xb   :  { %s50_s19 = sshll.u32 %s758_s18, 4  ;;  %s65_s20 = sshll.u32 %s759_s0, 4  ;;  %s51_s19 = int_to_ptr.vmem [resolvable:$true] %s50_s19  ;;  %s66_s20 = int_to_ptr.vmem [resolvable:$true] %s65_s20 }
   0xc   :  { %56 = dma.hbm_to_vmem [thread:$0]  %s49_s15, 1024, %s51_s19, [#allocation6], %s755_s9, %s755_s9, %s756_s10  }
   0xd   :  { %71 = dma.hbm_to_vmem [thread:$0]  %s64_s17, 1024, %s66_s20, [#allocation9], %s755_s9, %s755_s9, %s756_s10  }
   0xe   :  { %746 = dma.done.wait [#allocation3], 512  }
   0xf   :  { %747 = vsyncadd [#allocation3], 4294966784 }
  0x10   :  { %748 = dma.done.wait [#allocation6], 2048  }
  0x11   :  { %749 = vsyncadd [#allocation6], 4294965248 }
  0x12   :  { %750 = dma.done.wait [#allocation9], 1024  }
  0x13   :  { %751 = vsyncadd [#allocation9], 4294966272  ;;  %v589_v0 = vld [vmem:[#allocation5 + $0x38] sm:$0xff]  ;;  %v588_v1 = vld [vmem:[#allocation5 + $0x30] sm:$0xff]  ;;  %s451_s26 = sshll.u32 %s834_s7, 4  ;;  %s761_s27 = smov 128   ;;  %s452_s26 = int_to_ptr.hbm [resolvable:$true] %s451_s26 }
  0x14   :  { %190 = vmatpush.bf16.msra.mxu0 %v589_v0  ;;  %606 = vmatpush.bf16.msra.mxu3 %v589_v0  ;;  %v587_v2 = vld [vmem:[#allocation5 + $0x28] sm:$0xff]  ;;  %v586_v3 = vld [vmem:[#allocation5 + $0x20] sm:$0xff]  ;;  %v585_v4 = vld [vmem:[#allocation5 + $0x18] sm:$0xff]  ;;  %s762_s28 = smov 8  }
  0x15   :  { %v584_v5 = vld [vmem:[#allocation5 + $0x10] sm:$0xff]  ;;  %v583_v6 = vld [vmem:[#allocation5 + $0x8] sm:$0xff]  ;;  %v582_v7 = vld [vmem:[#allocation5] sm:$0xff] }
  0x16   :  { %v578_v8 = vld [vmem:[#allocation2] sm:$0xff]  ;;  %v579_v9 = vld [vmem:[#allocation2 + $0x8] sm:$0xff]  ;;  %v597_v10 = vld [vmem:[#allocation7 + $0x38] sm:$0xff] }
  0x17   :  { %299 = vmatpush.bf16.msra.mxu1 %v597_v10  ;;  %v596_v11 = vld [vmem:[#allocation7 + $0x30] sm:$0xff]  ;;  %v595_v12 = vld [vmem:[#allocation7 + $0x28] sm:$0xff]  ;;  %v594_v13 = vld [vmem:[#allocation7 + $0x20] sm:$0xff] }
  0x18   :  { %191 = vmatpush.bf16.msra.mxu0 %v588_v1  ;;  %607 = vmatpush.bf16.msra.mxu3 %v588_v1  ;;  %v580_v14 = vld [vmem:[#allocation2 + $0x10] sm:$0xff]  ;;  %v581_v15 = vld [vmem:[#allocation2 + $0x18] sm:$0xff]  ;;  %v591_v18 = vld [vmem:[#allocation7 + $0x8] sm:$0xff] }
  0x19   :  { %v593_v16 = vld [vmem:[#allocation7 + $0x18] sm:$0xff]  ;;  %v592_v17 = vld [vmem:[#allocation7 + $0x10] sm:$0xff]  ;;  %v590_v19 = vld [vmem:[#allocation7] sm:$0xff] }
  0x1a   :  { %v623_v21 = vld [vmem:[%s829_s2] ss:$0 sm:$0xff]  ;;  %v605_v37 = vld [vmem:[#allocation8 + $0x38] sm:$0xff]  ;;  %v604_v38 = vld [vmem:[#allocation8 + $0x30] sm:$0xff] }
  0x1b   :  { %300 = vmatpush.bf16.msra.mxu1 %v596_v11  ;;  %408 = vmatpush.bf16.msra.mxu2 %v605_v37  ;;  %v603_v41 = vld [vmem:[#allocation8 + $0x28] sm:$0xff]  ;;  %v602_v45 = vld [vmem:[#allocation8 + $0x20] sm:$0xff]  ;;  %v601_v53 = vld [vmem:[#allocation8 + $0x18] sm:$0xff] }
  0x1c   :  { %192 = vmatpush.bf16.msra.mxu0 %v587_v2  ;;  %608 = vmatpush.bf16.msra.mxu3 %v587_v2  ;;  %v600_v54 = vld [vmem:[#allocation8 + $0x10] sm:$0xff]  ;;  %v599_v55 = vld [vmem:[#allocation8 + $0x8] sm:$0xff]  ;;  %v598_v56 = vld [vmem:[#allocation8] sm:$0xff] }
  0x1d   :  { %v624_v58 = vld [vmem:[%s831_s4] ss:$0 sm:$0xff] }
  0x1f   :  { %301 = vmatpush.bf16.msra.mxu1 %v595_v12  ;;  %409 = vmatpush.bf16.msra.mxu2 %v604_v38 }
  0x20   :  { %193 = vmatpush.bf16.msra.mxu0 %v586_v3  ;;  %609 = vmatpush.bf16.msra.mxu3 %v586_v3 }
  0x23   :  { %302 = vmatpush.bf16.msra.mxu1 %v594_v13  ;;  %410 = vmatpush.bf16.msra.mxu2 %v603_v41 }
  0x24   :  { %194 = vmatpush.bf16.msra.mxu0 %v585_v4  ;;  %610 = vmatpush.bf16.msra.mxu3 %v585_v4 }
  0x27   :  { %303 = vmatpush.bf16.msra.mxu1 %v593_v16  ;;  %411 = vmatpush.bf16.msra.mxu2 %v602_v45 }
  0x28   :  { %195 = vmatpush.bf16.msra.mxu0 %v584_v5  ;;  %611 = vmatpush.bf16.msra.mxu3 %v584_v5 }
  0x2b   :  { %304 = vmatpush.bf16.msra.mxu1 %v592_v17  ;;  %412 = vmatpush.bf16.msra.mxu2 %v601_v53 }
  0x2c   :  { %196 = vmatpush.bf16.msra.mxu0 %v583_v6  ;;  %612 = vmatpush.bf16.msra.mxu3 %v583_v6 }
  0x2f   :  { %305 = vmatpush.bf16.msra.mxu1 %v591_v18  ;;  %413 = vmatpush.bf16.msra.mxu2 %v600_v54 }
  0x30   :  { %197 = vmatpush.bf16.msra.mxu0 %v582_v7  ;;  %613 = vmatpush.bf16.msra.mxu3 %v582_v7 }
  0x33   :  { %198 = vmatmul.bf16.vlgmr.msra.gmra.mxu0 %v578_v8  ;;  %203 = vmatmul.bf16.vlgmr.msra.gmra.mxu3 %v579_v9 }
  0x34   :  { %306 = vmatpush.bf16.msra.mxu1 %v590_v19  ;;  %414 = vmatpush.bf16.msra.mxu2 %v599_v55 }
  0x38   :  { %415 = vmatpush.bf16.msra.mxu2 %v598_v56 }
  0x43   :  { %208 = vmatmul.bf16.gmra.mxu3 %v580_v14 }
  0x53   :  { %213 = vmatmul.bf16.gmra.mxu3 %v581_v15 }
  0xb0   :  { %v199_v20 = vpop.f32.mrf.mxu0 }
  0xb1   :  { %v200_v23 = vadd.f32 %v623_v21, %v199_v20 }
  0xb3   :  { %v219_v26 = vmax.f32 %v200_v23, 0.0 }
  0xb6   :  { %v204_v22 = vpop.f32.mrf.mxu3 }
  0xb7   :  { %v205_v30 = vadd.f32 %v623_v21, %v204_v22  ;;  %v625_v22 = vld [vmem:[%s833_s6] ss:$0 sm:$0xff]  ;;  %s760_s6 = smov [#allocation10]  }
  0xb8   :  { %v201_v24 = vpop.f32.mrf.mxu0  ;;  %s449_s23 = sshll.u32 %s760_s6, 4  ;;  %s450_s23 = int_to_ptr.vmem [resolvable:$true] %s449_s23 }
  0xb9   :  { %v202_v25 = vadd.f32 %v623_v21, %v201_v24  ;;  %v221_v33 = vmax.f32 %v205_v30, 0.0 }
  0xbb   :  { %v220_v27 = vmax.f32 %v202_v25, 0.0 }
  0xbd   :  { %v227_v28 = vpack.c.bf16 %v220_v27, %v219_v26 }
  0xbe   :  { %v206_v29 = vpop.f32.mrf.mxu3 }
  0xbf   :  { %307 = vmatmul.bf16.vlgmr.msra.gmra.mxu1 %v227_v28  ;;  %v207_v31 = vadd.f32 %v623_v21, %v206_v29 }
  0xc1   :  { %v222_v34 = vmax.f32 %v207_v31, 0.0 }
  0xc3   :  { %v228_v35 = vpack.c.bf16 %v222_v34, %v221_v33 }
  0xc6   :  { %v209_v32 = vpop.f32.mrf.mxu3 }
  0xc7   :  { %v210_v39 = vadd.f32 %v623_v21, %v209_v32 }
  0xc9   :  { %v223_v43 = vmax.f32 %v210_v39, 0.0 }
  0xce   :  { %v211_v36 = vpop.f32.mrf.mxu3 }
  0xcf   :  { %312 = vmatmul.bf16.gmra.mxu1 %v228_v35  ;;  %v212_v40 = vadd.f32 %v623_v21, %v211_v36 }
  0xd1   :  { %v224_v44 = vmax.f32 %v212_v40, 0.0 }
  0xd3   :  { %v229_v46 = vpack.c.bf16 %v224_v44, %v223_v43 }
  0xd6   :  { %v214_v42 = vpop.f32.mrf.mxu3 }
  0xd7   :  { %v215_v48 = vadd.f32 %v623_v21, %v214_v42 }
  0xd9   :  { %v225_v50 = vmax.f32 %v215_v48, 0.0 }
  0xde   :  { %v216_v47 = vpop.f32.mrf.mxu3 }
  0xdf   :  { %317 = vmatmul.bf16.gmra.mxu1 %v229_v46  ;;  %v217_v49 = vadd.f32 %v623_v21, %v216_v47 }
  0xe1   :  { %v226_v51 = vmax.f32 %v217_v49, 0.0 }
  0xe3   :  { %v230_v52 = vpack.c.bf16 %v226_v51, %v225_v50 }
  0xef   :  { %322 = vmatmul.bf16.gmra.mxu1 %v230_v52 }
 0x13c   :  { %v308_v57 = vpop.f32.mrf.mxu1 }
 0x13d   :  { %v309_v59 = vadd.f32 %v624_v58, %v308_v57 }
 0x13f   :  { %v328_v62 = vmax.f32 %v309_v59, 0.0 }
 0x144   :  { %v310_v60 = vpop.f32.mrf.mxu1 }
 0x145   :  { %v311_v61 = vadd.f32 %v624_v58, %v310_v60 }
 0x147   :  { %v329_v63 = vmax.f32 %v311_v61, 0.0 }
 0x149   :  { %v336_v0 = vpack.c.bf16 %v329_v63, %v328_v62 }
 0x14b   :  { %416 = vmatmul.bf16.vlgmr.msra.gmra.mxu2 %v336_v0 }
 0x14c   :  { %v313_v1 = vpop.f32.mrf.mxu1 }
 0x14d   :  { %v314_v2 = vadd.f32 %v624_v58, %v313_v1 }
 0x14f   :  { %v330_v5 = vmax.f32 %v314_v2, 0.0 }
 0x154   :  { %v315_v3 = vpop.f32.mrf.mxu1 }
 0x155   :  { %v316_v4 = vadd.f32 %v624_v58, %v315_v3 }
 0x157   :  { %v331_v6 = vmax.f32 %v316_v4, 0.0 }
 0x159   :  { %v337_v7 = vpack.c.bf16 %v331_v6, %v330_v5 }
 0x15b   :  { %421 = vmatmul.bf16.gmra.mxu2 %v337_v7 }
 0x15c   :  { %v318_v8 = vpop.f32.mrf.mxu1 }
 0x15d   :  { %v319_v9 = vadd.f32 %v624_v58, %v318_v8 }
 0x15f   :  { %v332_v12 = vmax.f32 %v319_v9, 0.0 }
 0x164   :  { %v320_v10 = vpop.f32.mrf.mxu1 }
 0x165   :  { %v321_v11 = vadd.f32 %v624_v58, %v320_v10 }
 0x167   :  { %v333_v13 = vmax.f32 %v321_v11, 0.0 }
 0x169   :  { %v338_v14 = vpack.c.bf16 %v333_v13, %v332_v12 }
 0x16b   :  { %426 = vmatmul.bf16.gmra.mxu2 %v338_v14 }
 0x16c   :  { %v323_v15 = vpop.f32.mrf.mxu1 }
 0x16d   :  { %v324_v16 = vadd.f32 %v624_v58, %v323_v15 }
 0x16f   :  { %v334_v19 = vmax.f32 %v324_v16, 0.0 }
 0x174   :  { %v325_v17 = vpop.f32.mrf.mxu1 }
 0x175   :  { %v326_v18 = vadd.f32 %v624_v58, %v325_v17 }
 0x177   :  { %v335_v20 = vmax.f32 %v326_v18, 0.0 }
 0x179   :  { %v339_v21 = vpack.c.bf16 %v335_v20, %v334_v19 }
 0x17b   :  { %431 = vmatmul.bf16.gmra.mxu2 %v339_v21 }
 0x1ce   :  { %v417_v23 = vpop.f32.mrf.mxu2 }
 0x1cf   :  { %v418_v24 = vadd.f32 %v625_v22, %v417_v23 }
 0x1d1   :  { %437 = vst [vmem:[#allocation10] sm:$0xff] %v418_v24 }
 0x1d6   :  { %v419_v25 = vpop.f32.mrf.mxu2 }
 0x1d7   :  { %v420_v26 = vadd.f32 %v625_v22, %v419_v25 }
 0x1d9   :  { %438 = vst [vmem:[#allocation10 + $0x8] sm:$0xff] %v420_v26 }
 0x1de   :  { %v422_v27 = vpop.f32.mrf.mxu2 }
 0x1df   :  { %v423_v28 = vadd.f32 %v625_v22, %v422_v27 }
 0x1e1   :  { %439 = vst [vmem:[#allocation10 + $0x10] sm:$0xff] %v423_v28 }
 0x1e6   :  { %v424_v29 = vpop.f32.mrf.mxu2 }
 0x1e7   :  { %v425_v30 = vadd.f32 %v625_v22, %v424_v29 }
 0x1e9   :  { %440 = vst [vmem:[#allocation10 + $0x18] sm:$0xff] %v425_v30 }
 0x1ee   :  { %v427_v31 = vpop.f32.mrf.mxu2 }
 0x1ef   :  { %v428_v32 = vadd.f32 %v625_v22, %v427_v31 }
 0x1f1   :  { %441 = vst [vmem:[#allocation10 + $0x20] sm:$0xff] %v428_v32 }
 0x1f6   :  { %v429_v33 = vpop.f32.mrf.mxu2 }
 0x1f7   :  { %v430_v34 = vadd.f32 %v625_v22, %v429_v33 }
 0x1f9   :  { %442 = vst [vmem:[#allocation10 + $0x28] sm:$0xff] %v430_v34 }
 0x1fe   :  { %v432_v35 = vpop.f32.mrf.mxu2 }
 0x1ff   :  { %v433_v36 = vadd.f32 %v625_v22, %v432_v35 }
 0x201   :  { %443 = vst [vmem:[#allocation10 + $0x30] sm:$0xff] %v433_v36 }
 0x206   :  { %v434_v37 = vpop.f32.mrf.mxu2 }
 0x207   :  { %v435_v38 = vadd.f32 %v625_v22, %v434_v37 }
 0x209   :  { %444 = vst [vmem:[#allocation10 + $0x38] sm:$0xff] %v435_v38 }
 0x20a   :  { %457 = dma.vmem_to_hbm [thread:$0]  %s450_s23, 1024, %s452_s26, [#allocation4], %s761_s27, %s761_s27, %s762_s28  }
 0x20b   :  { %752 = dma.done.wait [#allocation4], 1024  }
 0x20c   :  { %753 = vsyncadd [#allocation4], 4294966272 }
 0x20d   :  { %462 = vsyncpa [#allocation3], 1 }
 0x20e   :  { %463 = vsyncpa [#allocation6], 1 }
 0x20f   :  { %464 = vsyncpa [#allocation9], 1 }
 0x210   :  { %465 = vsyncpa [#allocation4], 1 }

</bundles_post_ra>
